<compile_context>
chip_gen: v6e
topology: v6e:2x2x1
jax: 0.10.0
libtpu: 0.0.40
codegen_flags: <defaults>
</compile_context>

<pallas_src>
import functools

import jax
import jax.numpy as jnp
from jax import lax
from jax.experimental import pallas as pl
from jax.experimental.pallas import tpu as pltpu

_NBUF = 4                        # gather-pipeline depth (power of two)
_FAST_VOCAB_MAX = 2048           # fast path: max vocab rows staged in VMEM
_FAST_TABLE_BYTES_MAX = 2 << 20  # fast path: table <= 2 MiB (x2 buffers fits
                                 # easily inside v7x's 32 MiB scoped VMEM)
_FAST_SEQ_MAX = 256              # fast path statically unrolls the position loop


def _pick_row_block(n_rows, max_rb):
    """Rows pooled per grid step: big enough to amortize per-step overhead,
    small enough that the parallel grid keeps >= 2 steps (v7x has 2 cores)."""
    rb = max_rb
    while rb > 8 and (n_rows + rb - 1) // rb < 2:
        rb //= 2
    return rb


def _vmem_pool_kernel(idxs_ref, lens_ref, emb_ref, out_ref, *,
                      seq_len, vocab, pool):
    """Small-vocab path: table resident in VMEM, gather via one-hot matmul.

    idxs_ref: VMEM (TB, S) int32   lens_ref: VMEM (TB, 1) int32
    emb_ref : VMEM (V, D)          out_ref : VMEM (TB, D) f32
    """
    table = emb_ref[...].astype(jnp.float32)                  # (V, D)
    idx = idxs_ref[...]                                       # (TB, S)
    lens = lens_ref[...]                                      # (TB, 1)
    tb = idx.shape[0]
    iota_v = lax.broadcasted_iota(jnp.int32, (tb, vocab), 1)  # (TB, V)

    if pool == "mean":
        # counts[j, v] = #{s < len_j : idx[j, s] == v};  pooled = counts @ table
        counts = jnp.zeros((tb, vocab), jnp.float32)
        for s in range(seq_len):                              # static unroll
            oh = (idx[:, s:s + 1] == iota_v) & (s < lens)
            counts = counts + oh.astype(jnp.float32)
        pooled = jnp.dot(counts, table, preferred_element_type=jnp.float32)
        denom = jnp.maximum(lens, 1).astype(jnp.float32)      # guards padded rows
        out_ref[...] = (pooled / denom).astype(out_ref.dtype)
    else:  # "max"
        acc = jnp.full((tb, table.shape[1]), -jnp.inf, jnp.float32)
        for s in range(seq_len):                              # static unroll
            oh = (idx[:, s:s + 1] == iota_v).astype(jnp.float32)
            row = jnp.dot(oh, table, preferred_element_type=jnp.float32)
            acc = jnp.maximum(acc, jnp.where(s < lens, row, -jnp.inf))
        # Padded (length-0) rows get 0, not -inf.
        out_ref[...] = jnp.where(lens > 0, acc, 0.0).astype(out_ref.dtype)


def _gather_pool_kernel(idxs_smem, lens_smem, lens_ref, emb_hbm, out_ref,
                        gbuf, sems, *, seq_len, row_block, pool, nbuf):
    """Large-vocab path: HBM row gather with an nbuf-deep DMA pipeline.

    idxs_smem: SMEM (R*S,) int32   lens_smem: SMEM (R,) int32   (prefetched)
    lens_ref : VMEM (TB, 1) int32  emb_hbm  : HBM (V, D) native dtype
    out_ref  : VMEM (TB, D) f32
    gbuf     : VMEM (nbuf, TB, D)  sems     : DMA sems (nbuf, TB)
    """
    rb = pl.program_id(0)
    base_row = rb * row_block
    base_tok = base_row * seq_len

    # Per-row lengths as SMEM scalars (same source as the vector mask below),
    # read once per block, before any DMA wait.
    row_len = [lens_smem[base_row + j] for j in range(row_block)]
    max_len = row_len[0]
    for j in range(1, row_block):
        max_len = jnp.maximum(max_len, row_len[j])

    # Prime the pipeline: positions 0 .. nbuf-2 (skipping exhausted rows, which
    # also keeps the SMEM token read in-bounds since len <= S).
    for k in range(min(nbuf - 1, seq_len)):
        for j in range(row_block):
            @pl.when(k < row_len[j])
            def _():
                tok = idxs_smem[base_tok + j * seq_len + k]
                pltpu.make_async_copy(emb_hbm.at[tok], gbuf.at[k, j],
                                      sems.at[k, j]).start()

    if pool == "mean":
        out_ref[...] = jnp.zeros(out_ref.shape, out_ref.dtype)
    else:
        out_ref[...] = jnp.full(out_ref.shape, -jnp.inf, out_ref.dtype)

    lens_vec = lens_ref[...]                                  # (TB, 1)

    # Only iterate up to the longest sentence in this block; shorter rows stop
    # issuing DMAs (and are masked out of the pool) via the SAME lengths.
    @pl.loop(0, max_len)
    def _(s):
        slot = s & (nbuf - 1)
        nxt = s + (nbuf - 1)
        nxt_slot = nxt & (nbuf - 1)

        # SMEM token-id reads for the NEXT fetch, hoisted above the DMA waits
        # (a wait breaks SMEM store->load forwarding).  Read is clamped
        # in-bounds; the guarded start below ignores it when invalid.
        nxt_rd = jnp.minimum(nxt, seq_len - 1)
        nxt_tok = [idxs_smem[base_tok + j * seq_len + nxt_rd]
                   for j in range(row_block)]

        # Wait for position s's gathered rows (only rows that fetched them).
        for j in range(row_block):
            @pl.when(s < row_len[j])
            def _():
                pltpu.make_async_copy(emb_hbm.at[0], gbuf.at[slot, j],
                                      sems.at[slot, j]).wait()

        # Keep ~nbuf positions' worth of row DMAs in flight.
        for j in range(row_block):
            @pl.when(nxt < row_len[j])
            def _():
                pltpu.make_async_copy(emb_hbm.at[nxt_tok[j]],
                                      gbuf.at[nxt_slot, j],
                                      sems.at[nxt_slot, j]).start()

        rows = gbuf[slot].astype(jnp.float32)                 # (TB, D)
        valid = s < lens_vec                                  # (TB, 1)
        if pool == "mean":
            out_ref[...] += jnp.where(valid, rows, 0.0)
        else:
            out_ref[...] = jnp.maximum(out_ref[...],
                                       jnp.where(valid, rows, -jnp.inf))

    if pool == "mean":
        denom = jnp.maximum(lens_vec, 1).astype(jnp.float32)
        out_ref[...] = out_ref[...] / denom                   # exact division
    else:
        out_ref[...] = jnp.where(lens_vec > 0, out_ref[...], 0.0)


def _pooled_embed(emb_table, idxs, lengths, *, pool="mean", force_gather=False):
    """Length-masked mean/max pooled embedding lookup.

    emb_table (V, D), idxs (R, S) int, lengths (R,) int -> (R, D) f32.
    """
    if pool not in ("mean", "max"):
        raise ValueError(f"unsupported pool mode: {pool}")
    R, S = idxs.shape
    V, D = emb_table.shape

    idxs = idxs.astype(jnp.int32)
    # The pooling mask and the DMA-skip guard share these clamped lengths.
    lengths = jnp.minimum(lengths.astype(jnp.int32), S)

    table_bytes = V * D * emb_table.dtype.itemsize
    use_fast = (not force_gather and V <= _FAST_VOCAB_MAX
                and table_bytes <= _FAST_TABLE_BYTES_MAX and S <= _FAST_SEQ_MAX)

    row_block = _pick_row_block(R, 32 if use_fast else 16)

    Rp = pl.cdiv(R, row_block) * row_block
    if Rp != R:                                   # pad rows: token 0, length 0
        idxs = jnp.pad(idxs, ((0, Rp - R), (0, 0)))
        lengths = jnp.pad(lengths, (0, Rp - R))
    lens2 = lengths.reshape(Rp, 1)

    if use_fast:
        kernel = functools.partial(_vmem_pool_kernel, seq_len=S, vocab=V,
                                   pool=pool)
        out = pl.pallas_call(
            kernel,
            out_shape=jax.ShapeDtypeStruct((Rp, D), jnp.float32),
            grid_spec=pltpu.PrefetchScalarGridSpec(
                num_scalar_prefetch=0,
                grid=(Rp // row_block,),
                in_specs=[
                    pl.BlockSpec((row_block, S), lambda rb: (rb, 0)),
                    pl.BlockSpec((row_block, 1), lambda rb: (rb, 0)),
                    # Constant index_map -> the table is DMA'd once and stays
                    # resident in VMEM across the whole grid.
                    pl.BlockSpec((V, D), lambda rb: (0, 0)),
                ],
                out_specs=pl.BlockSpec((row_block, D), lambda rb: (rb, 0)),
            ),
            compiler_params=pltpu.CompilerParams(
                dimension_semantics=("parallel",)),
        )(idxs, lens2, emb_table)
    else:
        # TODO(synk): for very large fused batches the flat scalar-prefetched
        # idxs (R*S int32 in SMEM) should be chunked in the wrapper.
        kernel = functools.partial(_gather_pool_kernel, seq_len=S,
                                   row_block=row_block, pool=pool, nbuf=_NBUF)
        out = pl.pallas_call(
            kernel,
            out_shape=jax.ShapeDtypeStruct((Rp, D), jnp.float32),
            grid_spec=pltpu.PrefetchScalarGridSpec(
                num_scalar_prefetch=2,                 # idxs, lengths -> SMEM
                grid=(Rp // row_block,),
                in_specs=[
                    pl.BlockSpec((row_block, 1), lambda rb, idxs, lens: (rb, 0)),
                    pl.BlockSpec(memory_space=pl.ANY),   # table stays in HBM
                ],
                out_specs=pl.BlockSpec((row_block, D),
                                       lambda rb, idxs, lens: (rb, 0)),
                scratch_shapes=[
                    pltpu.VMEM((_NBUF, row_block, D), emb_table.dtype),
                    pltpu.SemaphoreType.DMA((_NBUF, row_block)),
                ],
            ),
            compiler_params=pltpu.CompilerParams(
                dimension_semantics=("parallel",)),
        )(idxs.reshape(-1), lengths, lens2, emb_table)
    return out[:R]


def encode(emb_table, idxs, lengths, *, pool="mean", dropout=0.0):
    """Pallas equivalent of Averaging.encode (eval mode)."""
    # TODO(synk): training-mode dropout (F.dropout) is not implemented; at
    # eval time dropout is the identity, which is what we reproduce here.
    del dropout
    return _pooled_embed(emb_table, idxs, lengths, pool=pool)


def averaging_forward(emb_table, batch, *, pool="mean"):
    """Pallas equivalent of Averaging.forward.

    All four encode() calls (g1, g2, p1, p2) are fused into a single
    pallas_call: one kernel launch, one pass over the embedding table.
    """
    names = ["g1", "g2", "p1", "p2"]
    S = max(batch[n].shape[1] for n in names)
    idxs = jnp.concatenate(
        [jnp.pad(batch[n].astype(jnp.int32),
                 ((0, 0), (0, S - batch[n].shape[1]))) for n in names], axis=0)
    lens = jnp.concatenate([batch[n + "_l"].astype(jnp.int32) for n in names])
    pooled = _pooled_embed(emb_table, idxs, lens, pool=pool)
    sizes = [batch[n].shape[0] for n in names]
    offs = [0]
    for b in sizes:
        offs.append(offs[-1] + b)
    return tuple(pooled[offs[i]:offs[i + 1]] for i in range(4))


def _encode_ref(emb_table, idxs, lengths, pool):
    """Pure-JAX reference for correctness checking."""
    _, S = idxs.shape
    we = emb_table[idxs].astype(jnp.float32)                  # (B, S, D)
    mask = jnp.arange(S)[None, :] < lengths[:, None]          # (B, S)
    if pool == "mean":
        s = jnp.sum(we * mask[..., None], axis=1)
        return s / lengths[:, None].astype(jnp.float32)
    neg = jnp.full_like(we, -jnp.inf)
    return jnp.max(jnp.where(mask[..., None], we, neg), axis=1)


if __name__ == "__main__":
    # Small deterministic config (stands in for args.dim / vocab / batchsize).
    V, D = 128, 32        # vocab size, embedding dim (args.dim)
    B, S = 2, 16          # batch size, padded sequence length
    POOL = "mean"         # args.pool

    key = jax.random.PRNGKey(0)
    k_emb, k_idx, k_len = jax.random.split(key, 3)

    # nn.Embedding(len(vocab), dim) default init ~ N(0, 1).
    emb_table = jax.random.normal(k_emb, (V, D), dtype=jnp.float32)

    names = ["g1", "g2", "p1", "p2"]
    idx_keys = jax.random.split(k_idx, 4)
    len_keys = jax.random.split(k_len, 4)
    batch = {}
    for name, ki, kl in zip(names, idx_keys, len_keys):
        batch[name] = jax.random.randint(ki, (B, S), 0, V, dtype=jnp.int32)
        batch[name + "_l"] = jax.random.randint(kl, (B,), 1, S + 1,
                                                dtype=jnp.int32)

    # Fused forward (small-vocab fast path: table resident in VMEM).
    outs = jax.block_until_ready(averaging_forward(emb_table, batch, pool=POOL))
    for name, out in zip(names, outs):
        ref = _encode_ref(emb_table, batch[name], batch[name + "_l"], POOL)
        assert jnp.allclose(out, ref, atol=1e-5, rtol=1e-5), name

    # Fast path, max pooling.
    out_max = jax.block_until_ready(
        encode(emb_table, batch["g1"], batch["g1_l"], pool="max"))
    ref_max = _encode_ref(emb_table, batch["g1"], batch["g1_l"], "max")
    assert jnp.allclose(out_max, ref_max, atol=1e-5, rtol=1e-5)

    # HBM-gather fallback (the path large vocabularies take), both pool modes.
    for p in ("mean", "max"):
        out_g = jax.block_until_ready(
            _pooled_embed(emb_table, batch["g2"], batch["g2_l"], pool=p,
                          force_gather=True))
        ref_g = _encode_ref(emb_table, batch["g2"], batch["g2_l"], p)
        assert jnp.allclose(out_g, ref_g, atol=1e-5, rtol=1e-5), p

    print("KERNEL_OK")
</pallas_src>

<mosaic_0001>
module attributes {stable_mosaic.version = 11 : i64} {
  func.func @_vmem_pool_kernel(%arg0: i32, %arg1: memref<8x16xi32, #tpu.memory_space<vmem>>, %arg2: memref<8x1xi32, #tpu.memory_space<vmem>>, %arg3: memref<128x32xf32, #tpu.memory_space<vmem>>, %arg4: memref<8x32xf32, #tpu.memory_space<vmem>>) attributes {dimension_semantics = [#tpu.dimension_semantics<parallel>], iteration_bounds = array<i64: 1>, scalar_prefetch = 0 : i64, scratch_operands = 0 : i64, tpu.core_type = #tpu.core_type<tc>, window_params = [{transform_indices = @transform_0, window_bounds = array<i64: 8, 16>}, {transform_indices = @transform_1, window_bounds = array<i64: 8, 1>}, {pipeline_mode = #tpu.pipeline_mode<synchronous>, transform_indices = @transform_2, window_bounds = array<i64: 128, 32>}, {transform_indices = @transform_3, window_bounds = array<i64: 8, 32>}]} {
    %c0 = arith.constant 0 : index
    %c0_0 = arith.constant 0 : index
    %0 = vector.load %arg3[%c0, %c0_0] : memref<128x32xf32, #tpu.memory_space<vmem>>, vector<128x32xf32>
    %c0_1 = arith.constant 0 : index
    %c0_2 = arith.constant 0 : index
    %1 = vector.load %arg1[%c0_1, %c0_2] : memref<8x16xi32, #tpu.memory_space<vmem>>, vector<8x16xi32>
    %c0_3 = arith.constant 0 : index
    %c0_4 = arith.constant 0 : index
    %2 = vector.load %arg2[%c0_3, %c0_4] : memref<8x1xi32, #tpu.memory_space<vmem>>, vector<8x1xi32>
    %3 = tpu.iota {dimensions = array<i32: 1>} : vector<8x128xi32>
    %cst = arith.constant 0.000000e+00 : f32
    %4 = vector.broadcast %cst : f32 to vector<8x128xf32>
    %5 = vector.extract_strided_slice %1 {offsets = [0, 0], sizes = [8, 1], strides = [1, 1]} : vector<8x16xi32> to vector<8x1xi32>
    %6 = vector.broadcast %5 : vector<8x1xi32> to vector<8x128xi32>
    %7 = arith.cmpi eq, %6, %3 : vector<8x128xi32>
    %c0_i32 = arith.constant 0 : i32
    %8 = vector.broadcast %c0_i32 : i32 to vector<8x1xi32>
    %9 = arith.cmpi sgt, %2, %8 : vector<8x1xi32>
    %10 = vector.broadcast %9 : vector<8x1xi1> to vector<8x128xi1>
    %11 = arith.andi %7, %10 : vector<8x128xi1>
    %12 = arith.extui %11 : vector<8x128xi1> to vector<8x128xi32>
    %13 = arith.sitofp %12 : vector<8x128xi32> to vector<8x128xf32>
    %14 = arith.addf %4, %13 : vector<8x128xf32>
    %15 = vector.extract_strided_slice %1 {offsets = [0, 1], sizes = [8, 1], strides = [1, 1]} : vector<8x16xi32> to vector<8x1xi32>
    %16 = vector.broadcast %15 : vector<8x1xi32> to vector<8x128xi32>
    %17 = arith.cmpi eq, %16, %3 : vector<8x128xi32>
    %c1_i32 = arith.constant 1 : i32
    %18 = vector.broadcast %c1_i32 : i32 to vector<8x1xi32>
    %19 = arith.cmpi sgt, %2, %18 : vector<8x1xi32>
    %20 = vector.broadcast %19 : vector<8x1xi1> to vector<8x128xi1>
    %21 = arith.andi %17, %20 : vector<8x128xi1>
    %22 = arith.extui %21 : vector<8x128xi1> to vector<8x128xi32>
    %23 = arith.sitofp %22 : vector<8x128xi32> to vector<8x128xf32>
    %24 = arith.addf %14, %23 : vector<8x128xf32>
    %25 = vector.extract_strided_slice %1 {offsets = [0, 2], sizes = [8, 1], strides = [1, 1]} : vector<8x16xi32> to vector<8x1xi32>
    %26 = vector.broadcast %25 : vector<8x1xi32> to vector<8x128xi32>
    %27 = arith.cmpi eq, %26, %3 : vector<8x128xi32>
    %c2_i32 = arith.constant 2 : i32
    %28 = vector.broadcast %c2_i32 : i32 to vector<8x1xi32>
    %29 = arith.cmpi sgt, %2, %28 : vector<8x1xi32>
    %30 = vector.broadcast %29 : vector<8x1xi1> to vector<8x128xi1>
    %31 = arith.andi %27, %30 : vector<8x128xi1>
    %32 = arith.extui %31 : vector<8x128xi1> to vector<8x128xi32>
    %33 = arith.sitofp %32 : vector<8x128xi32> to vector<8x128xf32>
    %34 = arith.addf %24, %33 : vector<8x128xf32>
    %35 = vector.extract_strided_slice %1 {offsets = [0, 3], sizes = [8, 1], strides = [1, 1]} : vector<8x16xi32> to vector<8x1xi32>
    %36 = vector.broadcast %35 : vector<8x1xi32> to vector<8x128xi32>
    %37 = arith.cmpi eq, %36, %3 : vector<8x128xi32>
    %c3_i32 = arith.constant 3 : i32
    %38 = vector.broadcast %c3_i32 : i32 to vector<8x1xi32>
    %39 = arith.cmpi sgt, %2, %38 : vector<8x1xi32>
    %40 = vector.broadcast %39 : vector<8x1xi1> to vector<8x128xi1>
    %41 = arith.andi %37, %40 : vector<8x128xi1>
    %42 = arith.extui %41 : vector<8x128xi1> to vector<8x128xi32>
    %43 = arith.sitofp %42 : vector<8x128xi32> to vector<8x128xf32>
    %44 = arith.addf %34, %43 : vector<8x128xf32>
    %45 = vector.extract_strided_slice %1 {offsets = [0, 4], sizes = [8, 1], strides = [1, 1]} : vector<8x16xi32> to vector<8x1xi32>
    %46 = vector.broadcast %45 : vector<8x1xi32> to vector<8x128xi32>
    %47 = arith.cmpi eq, %46, %3 : vector<8x128xi32>
    %c4_i32 = arith.constant 4 : i32
    %48 = vector.broadcast %c4_i32 : i32 to vector<8x1xi32>
    %49 = arith.cmpi sgt, %2, %48 : vector<8x1xi32>
    %50 = vector.broadcast %49 : vector<8x1xi1> to vector<8x128xi1>
    %51 = arith.andi %47, %50 : vector<8x128xi1>
    %52 = arith.extui %51 : vector<8x128xi1> to vector<8x128xi32>
    %53 = arith.sitofp %52 : vector<8x128xi32> to vector<8x128xf32>
    %54 = arith.addf %44, %53 : vector<8x128xf32>
    %55 = vector.extract_strided_slice %1 {offsets = [0, 5], sizes = [8, 1], strides = [1, 1]} : vector<8x16xi32> to vector<8x1xi32>
    %56 = vector.broadcast %55 : vector<8x1xi32> to vector<8x128xi32>
    %57 = arith.cmpi eq, %56, %3 : vector<8x128xi32>
    %c5_i32 = arith.constant 5 : i32
    %58 = vector.broadcast %c5_i32 : i32 to vector<8x1xi32>
    %59 = arith.cmpi sgt, %2, %58 : vector<8x1xi32>
    %60 = vector.broadcast %59 : vector<8x1xi1> to vector<8x128xi1>
    %61 = arith.andi %57, %60 : vector<8x128xi1>
    %62 = arith.extui %61 : vector<8x128xi1> to vector<8x128xi32>
    %63 = arith.sitofp %62 : vector<8x128xi32> to vector<8x128xf32>
    %64 = arith.addf %54, %63 : vector<8x128xf32>
    %65 = vector.extract_strided_slice %1 {offsets = [0, 6], sizes = [8, 1], strides = [1, 1]} : vector<8x16xi32> to vector<8x1xi32>
    %66 = vector.broadcast %65 : vector<8x1xi32> to vector<8x128xi32>
    %67 = arith.cmpi eq, %66, %3 : vector<8x128xi32>
    %c6_i32 = arith.constant 6 : i32
    %68 = vector.broadcast %c6_i32 : i32 to vector<8x1xi32>
    %69 = arith.cmpi sgt, %2, %68 : vector<8x1xi32>
    %70 = vector.broadcast %69 : vector<8x1xi1> to vector<8x128xi1>
    %71 = arith.andi %67, %70 : vector<8x128xi1>
    %72 = arith.extui %71 : vector<8x128xi1> to vector<8x128xi32>
    %73 = arith.sitofp %72 : vector<8x128xi32> to vector<8x128xf32>
    %74 = arith.addf %64, %73 : vector<8x128xf32>
    %75 = vector.extract_strided_slice %1 {offsets = [0, 7], sizes = [8, 1], strides = [1, 1]} : vector<8x16xi32> to vector<8x1xi32>
    %76 = vector.broadcast %75 : vector<8x1xi32> to vector<8x128xi32>
    %77 = arith.cmpi eq, %76, %3 : vector<8x128xi32>
    %c7_i32 = arith.constant 7 : i32
    %78 = vector.broadcast %c7_i32 : i32 to vector<8x1xi32>
    %79 = arith.cmpi sgt, %2, %78 : vector<8x1xi32>
    %80 = vector.broadcast %79 : vector<8x1xi1> to vector<8x128xi1>
    %81 = arith.andi %77, %80 : vector<8x128xi1>
    %82 = arith.extui %81 : vector<8x128xi1> to vector<8x128xi32>
    %83 = arith.sitofp %82 : vector<8x128xi32> to vector<8x128xf32>
    %84 = arith.addf %74, %83 : vector<8x128xf32>
    %85 = vector.extract_strided_slice %1 {offsets = [0, 8], sizes = [8, 1], strides = [1, 1]} : vector<8x16xi32> to vector<8x1xi32>
    %86 = vector.broadcast %85 : vector<8x1xi32> to vector<8x128xi32>
    %87 = arith.cmpi eq, %86, %3 : vector<8x128xi32>
    %c8_i32 = arith.constant 8 : i32
    %88 = vector.broadcast %c8_i32 : i32 to vector<8x1xi32>
    %89 = arith.cmpi sgt, %2, %88 : vector<8x1xi32>
    %90 = vector.broadcast %89 : vector<8x1xi1> to vector<8x128xi1>
    %91 = arith.andi %87, %90 : vector<8x128xi1>
    %92 = arith.extui %91 : vector<8x128xi1> to vector<8x128xi32>
    %93 = arith.sitofp %92 : vector<8x128xi32> to vector<8x128xf32>
    %94 = arith.addf %84, %93 : vector<8x128xf32>
    %95 = vector.extract_strided_slice %1 {offsets = [0, 9], sizes = [8, 1], strides = [1, 1]} : vector<8x16xi32> to vector<8x1xi32>
    %96 = vector.broadcast %95 : vector<8x1xi32> to vector<8x128xi32>
    %97 = arith.cmpi eq, %96, %3 : vector<8x128xi32>
    %c9_i32 = arith.constant 9 : i32
    %98 = vector.broadcast %c9_i32 : i32 to vector<8x1xi32>
    %99 = arith.cmpi sgt, %2, %98 : vector<8x1xi32>
    %100 = vector.broadcast %99 : vector<8x1xi1> to vector<8x128xi1>
    %101 = arith.andi %97, %100 : vector<8x128xi1>
    %102 = arith.extui %101 : vector<8x128xi1> to vector<8x128xi32>
    %103 = arith.sitofp %102 : vector<8x128xi32> to vector<8x128xf32>
    %104 = arith.addf %94, %103 : vector<8x128xf32>
    %105 = vector.extract_strided_slice %1 {offsets = [0, 10], sizes = [8, 1], strides = [1, 1]} : vector<8x16xi32> to vector<8x1xi32>
    %106 = vector.broadcast %105 : vector<8x1xi32> to vector<8x128xi32>
    %107 = arith.cmpi eq, %106, %3 : vector<8x128xi32>
    %c10_i32 = arith.constant 10 : i32
    %108 = vector.broadcast %c10_i32 : i32 to vector<8x1xi32>
    %109 = arith.cmpi sgt, %2, %108 : vector<8x1xi32>
    %110 = vector.broadcast %109 : vector<8x1xi1> to vector<8x128xi1>
    %111 = arith.andi %107, %110 : vector<8x128xi1>
    %112 = arith.extui %111 : vector<8x128xi1> to vector<8x128xi32>
    %113 = arith.sitofp %112 : vector<8x128xi32> to vector<8x128xf32>
    %114 = arith.addf %104, %113 : vector<8x128xf32>
    %115 = vector.extract_strided_slice %1 {offsets = [0, 11], sizes = [8, 1], strides = [1, 1]} : vector<8x16xi32> to vector<8x1xi32>
    %116 = vector.broadcast %115 : vector<8x1xi32> to vector<8x128xi32>
    %117 = arith.cmpi eq, %116, %3 : vector<8x128xi32>
    %c11_i32 = arith.constant 11 : i32
    %118 = vector.broadcast %c11_i32 : i32 to vector<8x1xi32>
    %119 = arith.cmpi sgt, %2, %118 : vector<8x1xi32>
    %120 = vector.broadcast %119 : vector<8x1xi1> to vector<8x128xi1>
    %121 = arith.andi %117, %120 : vector<8x128xi1>
    %122 = arith.extui %121 : vector<8x128xi1> to vector<8x128xi32>
    %123 = arith.sitofp %122 : vector<8x128xi32> to vector<8x128xf32>
    %124 = arith.addf %114, %123 : vector<8x128xf32>
    %125 = vector.extract_strided_slice %1 {offsets = [0, 12], sizes = [8, 1], strides = [1, 1]} : vector<8x16xi32> to vector<8x1xi32>
    %126 = vector.broadcast %125 : vector<8x1xi32> to vector<8x128xi32>
    %127 = arith.cmpi eq, %126, %3 : vector<8x128xi32>
    %c12_i32 = arith.constant 12 : i32
    %128 = vector.broadcast %c12_i32 : i32 to vector<8x1xi32>
    %129 = arith.cmpi sgt, %2, %128 : vector<8x1xi32>
    %130 = vector.broadcast %129 : vector<8x1xi1> to vector<8x128xi1>
    %131 = arith.andi %127, %130 : vector<8x128xi1>
    %132 = arith.extui %131 : vector<8x128xi1> to vector<8x128xi32>
    %133 = arith.sitofp %132 : vector<8x128xi32> to vector<8x128xf32>
    %134 = arith.addf %124, %133 : vector<8x128xf32>
    %135 = vector.extract_strided_slice %1 {offsets = [0, 13], sizes = [8, 1], strides = [1, 1]} : vector<8x16xi32> to vector<8x1xi32>
    %136 = vector.broadcast %135 : vector<8x1xi32> to vector<8x128xi32>
    %137 = arith.cmpi eq, %136, %3 : vector<8x128xi32>
    %c13_i32 = arith.constant 13 : i32
    %138 = vector.broadcast %c13_i32 : i32 to vector<8x1xi32>
    %139 = arith.cmpi sgt, %2, %138 : vector<8x1xi32>
    %140 = vector.broadcast %139 : vector<8x1xi1> to vector<8x128xi1>
    %141 = arith.andi %137, %140 : vector<8x128xi1>
    %142 = arith.extui %141 : vector<8x128xi1> to vector<8x128xi32>
    %143 = arith.sitofp %142 : vector<8x128xi32> to vector<8x128xf32>
    %144 = arith.addf %134, %143 : vector<8x128xf32>
    %145 = vector.extract_strided_slice %1 {offsets = [0, 14], sizes = [8, 1], strides = [1, 1]} : vector<8x16xi32> to vector<8x1xi32>
    %146 = vector.broadcast %145 : vector<8x1xi32> to vector<8x128xi32>
    %147 = arith.cmpi eq, %146, %3 : vector<8x128xi32>
    %c14_i32 = arith.constant 14 : i32
    %148 = vector.broadcast %c14_i32 : i32 to vector<8x1xi32>
    %149 = arith.cmpi sgt, %2, %148 : vector<8x1xi32>
    %150 = vector.broadcast %149 : vector<8x1xi1> to vector<8x128xi1>
    %151 = arith.andi %147, %150 : vector<8x128xi1>
    %152 = arith.extui %151 : vector<8x128xi1> to vector<8x128xi32>
    %153 = arith.sitofp %152 : vector<8x128xi32> to vector<8x128xf32>
    %154 = arith.addf %144, %153 : vector<8x128xf32>
    %155 = vector.extract_strided_slice %1 {offsets = [0, 15], sizes = [8, 1], strides = [1, 1]} : vector<8x16xi32> to vector<8x1xi32>
    %156 = vector.broadcast %155 : vector<8x1xi32> to vector<8x128xi32>
    %157 = arith.cmpi eq, %156, %3 : vector<8x128xi32>
    %c15_i32 = arith.constant 15 : i32
    %158 = vector.broadcast %c15_i32 : i32 to vector<8x1xi32>
    %159 = arith.cmpi sgt, %2, %158 : vector<8x1xi32>
    %160 = vector.broadcast %159 : vector<8x1xi1> to vector<8x128xi1>
    %161 = arith.andi %157, %160 : vector<8x128xi1>
    %162 = arith.extui %161 : vector<8x128xi1> to vector<8x128xi32>
    %163 = arith.sitofp %162 : vector<8x128xi32> to vector<8x128xf32>
    %164 = arith.addf %154, %163 : vector<8x128xf32>
    %cst_5 = arith.constant dense<0.000000e+00> : vector<8x32xf32>
    %165 = tpu.matmul %164, %0, %cst_5 {dimension_numbers = #tpu.dot_dimension_numbers<[1], [0], [0], [1], [0, 0, 1, 1], [], []>} : vector<8x128xf32>, vector<128x32xf32>, vector<8x32xf32> -> vector<8x32xf32>
    %c1_i32_6 = arith.constant 1 : i32
    %166 = vector.broadcast %c1_i32_6 : i32 to vector<8x1xi32>
    %167 = arith.maxsi %2, %166 : vector<8x1xi32>
    %168 = arith.sitofp %167 : vector<8x1xi32> to vector<8x1xf32>
    %169 = vector.broadcast %168 : vector<8x1xf32> to vector<8x32xf32>
    %170 = arith.divf %165, %169 : vector<8x32xf32>
    %c0_7 = arith.constant 0 : index
    %c0_8 = arith.constant 0 : index
    %171 = vector.load %arg4[%c0_7, %c0_8] : memref<8x32xf32, #tpu.memory_space<vmem>>, vector<8x32xf32>
    tpu.vector_store %arg4[%c0_7, %c0_8], %170 {strides = array<i32>} : memref<8x32xf32, #tpu.memory_space<vmem>>, vector<8x32xf32>,
    return
  }
  func.func @transform_0(%arg0: i32) -> (i32, i32) {
    %c0_i32 = arith.constant 0 : i32
    %c0_i32_0 = arith.constant 0 : i32
    return %arg0, %c0_i32 : i32, i32
  }
  func.func @transform_1(%arg0: i32) -> (i32, i32) {
    %c0_i32 = arith.constant 0 : i32
    %c0_i32_0 = arith.constant 0 : i32
    return %arg0, %c0_i32 : i32, i32
  }
  func.func @transform_2(%arg0: i32) -> (i32, i32) {
    %c0_i32 = arith.constant 0 : i32
    %c0_i32_0 = arith.constant 0 : i32
    %c0_i32_1 = arith.constant 0 : i32
    return %c0_i32, %c0_i32_0 : i32, i32
  }
  func.func @transform_3(%arg0: i32) -> (i32, i32) {
    %c0_i32 = arith.constant 0 : i32
    %c0_i32_0 = arith.constant 0 : i32
    return %arg0, %c0_i32 : i32, i32
  }
}

</mosaic_0001>

<bundles_post_ra>
// kernel: tpu_custom_call.1
= control target key start
LH: loop header
LB: loop body
LE: loop exit
PB: predicated region body
PF: predicated region fallthrough
CT: control target
= control target key end

     0   :  { %v489_v2 = vmov 2   ;;  %v490_v3 = vmov 1   ;;  %s703_s0 = inlined_call_operand.vmem [shape: s32[8,16], index: 0, kind: input, shape index: {}]   ;;  %s704_s1 = inlined_call_operand.vmem [shape: s32[8,1], index: 1, kind: input, shape index: {}]   ;;  %s705_s2 = inlined_call_operand.vmem [shape: f32[128,32], index: 2, kind: input, shape index: {}]   ;;  %s706_s3 = inlined_call_operand.hbm [shape: f32[8,32], index: 3, kind: output, shape index: {}]  }
   0x1   :  { %v531_v0 = vld [vmem:[%s703_s0] sm:$0xff]  ;;  %444 = vset.pattern.permute.xlu0 %v489_v2  ;;  %442 = vset.pattern.permute.xlu1 %v490_v3 }
   0x2   :  { %v536_v1 = vld [vmem:[%s704_s1] sm:$0xff] }
   0x3   :  { %vm53_vm0 = vcmp.gt.s32.totalorder %v536_v1, 1 }
   0x4   :  { %8 = vsyncpa [#allocation3], 0  ;;  %64 = vperm.xlu0 %444, %v531_v0   ;;  %50 = vperm.xlu1 %442, %v531_v0   ;;  %v542_v4 = vsel %vm53_vm0, %v536_v1, 1  ;;  %v491_v5 = vmov 0   ;;  %vm67_vm1 = vcmp.gt.s32.totalorder %v536_v1, 2  ;;  %v492_v7 = vmov 5  }
   0x5   :  { %v54_v6 = vsel %vm53_vm0, 1, %v491_v5  ;;  %v68_v8 = vsel %vm67_vm1, 1, %v491_v5  ;;  %v493_v9 = vmov 8   ;;  %v494_v10 = vmov 0.0   ;;  %v30_v30 = vld [vmem:[%s705_s2 + $0x78] sm:$0xff]  ;;  %v29_v31 = vld [vmem:[%s705_s2 + $0x70] sm:$0xff] }
   0x6   :  { %388 = vmatprep.subr.mxu0 %v494_v10  ;;  %v495_v11 = vmov 3   ;;  %v496_v12 = vmov 11   ;;  %v497_v13 = vmov 4   ;;  %vm39_vm2 = vcmp.gt.s32.totalorder %v536_v1, 0  ;;  %v28_v33 = vld [vmem:[%s705_s2 + $0x68] sm:$0xff]  ;;  %v27_v34 = vld [vmem:[%s705_s2 + $0x60] sm:$0xff] }
   0x7   :  { %vm95_vm3 = vcmp.gt.s32.totalorder %v536_v1, 4  ;;  %v40_v14 = vsel %vm39_vm2, 1, %v491_v5  ;;  %vm81_vm4 = vcmp.gt.s32.totalorder %v536_v1, 3  ;;  %vm109_vm5 = vcmp.gt.s32.totalorder %v536_v1, 5  ;;  %389 = vmatpush3.msra.mxu0 %v30_v30  ;;  %v26_v35 = vld [vmem:[%s705_s2 + $0x58] sm:$0xff]  ;;  %v25_v37 = vld [vmem:[%s705_s2 + $0x50] sm:$0xff] }
   0x8   :  { %448 = vset.pattern.permute.xlu0 %v492_v7  ;;  %443 = vset.pattern.permute.xlu1 %v491_v5  ;;  %v96_v15 = vsel %vm95_vm3, 1, %v491_v5  ;;  %v82_v16 = vsel %vm81_vm4, 1, %v491_v5  ;;  %v110_v17 = vsel %vm109_vm5, 1, %v491_v5  ;;  %vm123_vm6 = vcmp.gt.s32.totalorder %v536_v1, 6  ;;  %v24_v38 = vld [vmem:[%s705_s2 + $0x48] sm:$0xff]  ;;  %v23_v39 = vld [vmem:[%s705_s2 + $0x40] sm:$0xff] }
   0x9   :  { %106 = vperm.xlu0 %448, %v531_v0   ;;  %56 = vperm.xlu1 %443, %v54_v6   ;;  %v124_v18 = vsel %vm123_vm6, 1, %v491_v5  ;;  %vm165_vm7 = vcmp.gt.s32.totalorder %v536_v1, 9  ;;  %v498_v19 = vmov 6   ;;  %vm207_vm8 = vcmp.gt.s32.totalorder %v536_v1, 12  ;;  %v22_v41 = vld [vmem:[%s705_s2 + $0x38] sm:$0xff]  ;;  %v21_v43 = vld [vmem:[%s705_s2 + $0x30] sm:$0xff] }
   0xa   :  { %v166_v20 = vsel %vm165_vm7, 1, %v491_v5  ;;  %v499_v21 = vmov 7   ;;  %vm137_vm9 = vcmp.gt.s32.totalorder %v536_v1, 7  ;;  %v208_v22 = vsel %vm207_vm8, 1, %v491_v5  ;;  %390 = vmatprep.subr.mxu0 %v494_v10  ;;  %v20_v44 = vld [vmem:[%s705_s2 + $0x28] sm:$0xff]  ;;  %v19_v46 = vld [vmem:[%s705_s2 + $0x20] sm:$0xff] }
   0xb   :  { %v138_v23 = vsel %vm137_vm9, 1, %v491_v5  ;;  %vm151_vm10 = vcmp.gt.s32.totalorder %v536_v1, 8  ;;  %v500_v25 = vmov 14   ;;  %vm249_vm11 = vcmp.gt.s32.totalorder %v536_v1, 15  ;;  %391 = vmatpush3.msra.mxu0 %v29_v31  ;;  %v18_v47 = vld [vmem:[%s705_s2 + $0x18] sm:$0xff]  ;;  %v17_v48 = vld [vmem:[%s705_s2 + $0x10] sm:$0xff] }
   0xc   :  { %v152_v24 = vsel %vm151_vm10, 1, %v491_v5  ;;  %v250_v26 = vsel %vm249_vm11, 1, %v491_v5  ;;  %v501_v27 = vmov 9   ;;  %v502_v28 = vmov 10   ;;  %392 = vmatprep.subr.mxu0 %v494_v10  ;;  %v16_v49 = vld [vmem:[%s705_s2 + $0x8] sm:$0xff]  ;;  %v15_v51 = vld [vmem:[%s705_s2] sm:$0xff] }
   0xd   :  { %452 = vset.pattern.permute.xlu0 %v493_v9  ;;  %70 = vperm.xlu1 %443, %v68_v8   ;;  %vm179_vm12 = vcmp.gt.s32.totalorder %v536_v1, 10  ;;  %vm193_vm13 = vcmp.gt.s32.totalorder %v536_v1, 11  ;;  %v503_v36 = vmov 12   ;;  %v504_v40 = vmov 13   ;;  %s507_s2 = smov [#allocation2]  }
   0xe   :  { %148 = vperm.xlu0 %452, %v531_v0   ;;  %v180_v29 = vsel %vm179_vm12, 1, %v491_v5  ;;  %v194_v32 = vsel %vm193_vm13, 1, %v491_v5  ;;  %393 = vmatpush3.msra.mxu0 %v28_v33  ;;  %vm221_vm14 = vcmp.gt.s32.totalorder %v536_v1, 13  ;;  %vm235_vm15 = vcmp.gt.s32.totalorder %v536_v1, 14  ;;  %s347_s17 = sshll.u32 %s507_s2, 4  ;;  %s348_s17 = int_to_ptr.vmem [resolvable:$true] %s347_s17 }
   0xf   :  { %394 = vmatprep.subr.mxu0 %v494_v10  ;;  %v222_v42 = vsel %vm221_vm14, 1, %v491_v5  ;;  %v236_v45 = vsel %vm235_vm15, 1, %v491_v5  ;;  %v505_v50 = vmov 15   ;;  %vm506_vm0 = vmmov 0   ;;  %s467_s18 = scalar_lea.vmem %s348_s17, 128  ;;  %p472_p1 = scmp.lt.s32.totalorder %s348_s17, %s348_s17 }
  0x10   :  { %395 = vmatpush3.msra.mxu0 %v27_v34  ;;  %420 = vmatprep.mubr.msk.f32.mxu0 %vm506_vm0, %v494_v10  ;;  %v331_v52 = vcvt.s32.f32 %v542_v4  ;;  %v33_v3 = vlaneseq  ;;  %p468_p0 = scmp.ne.s32.totalorder %s348_s17, %s467_s18  ;;  %p473_p2 = scmp.lt.s32.totalorder %s467_s18, %s467_s18 }
  0x11   :  { %445 = vset.pattern.permute.xlu1 %v495_v11  ;;  %396 = vmatprep.subr.mxu0 %v494_v10 }
  0x12   :  { %456 = vset.pattern.permute.xlu0 %v496_v12  ;;  %78 = vperm.xlu1 %445, %v531_v0   ;;  %p474_p3 = por %p473_p2, %p472_p1 }
  0x13   :  { %190 = vperm.xlu0 %456, %v531_v0   ;;  %397 = vmatpush3.msra.mxu0 %v26_v35 }
  0x14   :  { %398 = vmatprep.subr.mxu0 %v494_v10  ;;  %p475_p4 = pnand %p474_p3, %p468_p0 }
  0x15   :  { %399 = vmatpush3.msra.mxu0 %v25_v37 }
  0x16   :  { %446 = vset.pattern.permute.xlu1 %v497_v13  ;;  %400 = vmatprep.subr.mxu0 %v494_v10 }
  0x17   :  { %457 = vset.pattern.permute.xlu0 %v491_v5  ;;  %92 = vperm.xlu1 %446, %v531_v0  }
  0x18   :  { %36 = vperm.xlu0 %457, %v531_v0   ;;  %401 = vmatpush3.msra.mxu0 %v24_v38 }
  0x19   :  { %402 = vmatprep.subr.mxu0 %v494_v10 }
  0x1a   :  { %403 = vmatpush3.msra.mxu0 %v23_v39 }
  0x1b   :  { %447 = vset.pattern.permute.xlu1 %v491_v5  ;;  %404 = vmatprep.subr.mxu0 %v494_v10 }
  0x1c   :  { %42 = vperm.xlu0 %457, %v40_v14   ;;  %98 = vperm.xlu1 %447, %v96_v15  }
  0x1d   :  { %405 = vmatpush3.msra.mxu0 %v22_v41 }
  0x1e   :  { %406 = vmatprep.subr.mxu0 %v494_v10 }
  0x1f   :  { %407 = vmatpush3.msra.mxu0 %v21_v43 }
  0x20   :  { %84 = vperm.xlu0 %457, %v82_v16   ;;  %112 = vperm.xlu1 %447, %v110_v17  }
  0x21   :  { %408 = vmatprep.subr.mxu0 %v494_v10 }
  0x22   :  { %409 = vmatpush3.msra.mxu0 %v20_v44 }
  0x23   :  { %410 = vmatprep.subr.mxu0 %v494_v10 }
  0x24   :  { %449 = vset.pattern.permute.xlu1 %v498_v19  ;;  %126 = vperm.xlu0 %457, %v124_v18  }
  0x25   :  { %120 = vperm.xlu1 %449, %v531_v0   ;;  %411 = vmatpush3.msra.mxu0 %v19_v46 }
  0x26   :  { %412 = vmatprep.subr.mxu0 %v494_v10 }
  0x27   :  { %413 = vmatpush3.msra.mxu0 %v18_v47 }
  0x28   :  { %168 = vperm.xlu0 %457, %v166_v20   ;;  %414 = vmatprep.subr.mxu0 %v494_v10 }
  0x29   :  { %450 = vset.pattern.permute.xlu1 %v499_v21  ;;  %415 = vmatpush3.msra.mxu0 %v17_v48 }
  0x2a   :  { %134 = vperm.xlu1 %450, %v531_v0   ;;  %416 = vmatprep.subr.mxu0 %v494_v10 }
  0x2b   :  { %417 = vmatpush3.msra.mxu0 %v16_v49 }
  0x2c   :  { %210 = vperm.xlu0 %457, %v208_v22   ;;  %418 = vmatprep.subr.mxu0 %v494_v10 }
  0x2d   :  { %419 = vmatpush3.msra.mxu0 %v15_v51 }
  0x2e   :  { %451 = vset.pattern.permute.xlu1 %v491_v5 }
  0x2f   :  { %140 = vperm.xlu1 %451, %v138_v23  }
  0x30   :  { %461 = vset.pattern.permute.xlu0 %v500_v25 }
  0x31   :  { %232 = vperm.xlu0 %461, %v531_v0  }
  0x33   :  { %154 = vperm.xlu1 %451, %v152_v24  }
  0x35   :  { %463 = vset.pattern.permute.xlu0 %v491_v5 }
  0x36   :  { %252 = vperm.xlu0 %463, %v250_v26  }
  0x37   :  { %453 = vset.pattern.permute.xlu1 %v501_v27 }
  0x38   :  { %162 = vperm.xlu1 %453, %v531_v0  }
  0x3c   :  { %454 = vset.pattern.permute.xlu1 %v502_v28 }
  0x3d   :  { %176 = vperm.xlu1 %454, %v531_v0  }
  0x41   :  { %455 = vset.pattern.permute.xlu1 %v491_v5 }
  0x42   :  { %182 = vperm.xlu1 %455, %v180_v29  }
  0x46   :  { %196 = vperm.xlu1 %455, %v194_v32  }
  0x4a   :  { %458 = vset.pattern.permute.xlu1 %v503_v36 }
  0x4b   :  { %204 = vperm.xlu1 %458, %v531_v0  }
  0x4f   :  { %459 = vset.pattern.permute.xlu1 %v504_v40 }
  0x50   :  { %218 = vperm.xlu1 %459, %v531_v0  }
  0x54   :  { %460 = vset.pattern.permute.xlu1 %v491_v5 }
  0x55   :  { %224 = vperm.xlu1 %460, %v222_v42  }
  0x59   :  { %238 = vperm.xlu1 %460, %v236_v45  }
  0x5d   :  { %462 = vset.pattern.permute.xlu1 %v505_v50 }
  0x5e   :  { %246 = vperm.xlu1 %462, %v531_v0  }
  0x62   :  { %464 = vset.pattern.permute.xlu1 %v491_v5  ;;  %v665_v5 = vand.u32 127, %v33_v3 }
  0x63   :  { %334 = vperm.xlu1 %464, %v331_v52  }
  0x7f   :  { %v51_v53 = vpop.permute.xlu1 %50  ;;  %v65_v56 = vpop.permute.xlu0 %64 }
  0x80   :  { %vm52_vm5 = vcmp.eq.s32.totalorder %v51_v53, %v665_v5  ;;  %vm66_vm7 = vcmp.eq.s32.totalorder %v65_v56, %v665_v5 }
  0x84   :  { %v57_v54 = vpop.permute.xlu1 %56  ;;  %v107_v59 = vpop.permute.xlu0 %106 }
  0x85   :  { %vm58_vm3 = vcmp.eq.s32.totalorder %v57_v54, 1  ;;  %vm108_vm0 = vcmp.eq.s32.totalorder %v107_v59, %v665_v5 }
  0x86   :  { %vm59_vm6 = vmand %vm52_vm5, %vm58_vm3 }
  0x87   :  { %v356_v12 = vsel %vm59_vm6, 1.0, %v494_v10 }
  0x88   :  { %v71_v55 = vpop.permute.xlu1 %70 }
  0x89   :  { %v149_v61 = vpop.permute.xlu0 %148  ;;  %vm72_vm8 = vcmp.eq.s32.totalorder %v71_v55, 1 }
  0x8a   :  { %vm73_vm10 = vmand %vm66_vm7, %vm72_vm8  ;;  %vm150_vm7 = vcmp.eq.s32.totalorder %v149_v61, %v665_v5 }
  0x8b   :  { %v357_v15 = vsel %vm73_vm10, 1.0, %v494_v10 }
  0x8d   :  { %v79_v57 = vpop.permute.xlu1 %78 }
  0x8e   :  { %v663_v63 = vpop.permute.xlu0 %190  ;;  %vm80_vm11 = vcmp.eq.s32.totalorder %v79_v57, %v665_v5 }
  0x92   :  { %v93_v58 = vpop.permute.xlu1 %92 }
  0x93   :  { %v37_v1 = vpop.permute.xlu0 %36  ;;  %vm94_vm14 = vcmp.eq.s32.totalorder %v93_v58, %v665_v5 }
  0x94   :  { %vm38_vm1 = vcmp.eq.s32.totalorder %v37_v1, %v665_v5 }
  0x97   :  { %v99_v60 = vpop.permute.xlu1 %98  ;;  %v43_v6 = vpop.permute.xlu0 %42 }
  0x98   :  { %vm44_vm2 = vcmp.eq.s32.totalorder %v43_v6, 1  ;;  %vm100_vm13 = vcmp.eq.s32.totalorder %v99_v60, 1 }
  0x99   :  { %vm45_vm4 = vmand %vm38_vm1, %vm44_vm2 }
  0x9a   :  { %v355_v11 = vsel %vm45_vm4, 1.0, %v494_v10  ;;  %vm101_vm15 = vmand %vm94_vm14, %vm100_vm13 }
  0x9b   :  { %v113_v62 = vpop.permute.xlu1 %112  ;;  %v85_v8 = vpop.permute.xlu0 %84  ;;  %v62_v13 = vadd.f32 %v356_v12, %v355_v11  ;;  %v359_v22 = vsel %vm101_vm15, 1.0, %v494_v10 }
  0x9c   :  { %vm86_vm9 = vcmp.eq.s32.totalorder %v85_v8, 1  ;;  %vm114_vm1 = vcmp.eq.s32.totalorder %v113_v62, 1 }
  0x9d   :  { %vm87_vm12 = vmand %vm80_vm11, %vm86_vm9  ;;  %v76_v16 = vadd.f32 %v357_v15, %v62_v13 }
  0x9e   :  { %v358_v17 = vsel %vm87_vm12, 1.0, %v494_v10  ;;  %vm115_vm4 = vmand %vm108_vm0, %vm114_vm1 }
  0x9f   :  { %v90_v19 = vadd.f32 %v358_v17, %v76_v16  ;;  %v127_v20 = vpop.permute.xlu0 %126  ;;  %v360_v25 = vsel %vm115_vm4, 1.0, %v494_v10 }
  0xa0   :  { %v121_v0 = vpop.permute.xlu1 %120  ;;  %vm128_vm2 = vcmp.eq.s32.totalorder %v127_v20, 1 }
  0xa1   :  { %vm122_vm3 = vcmp.eq.s32.totalorder %v121_v0, %v665_v5  ;;  %v104_v23 = vadd.f32 %v359_v22, %v90_v19 }
  0xa2   :  { %vm129_vm6 = vmand %vm122_vm3, %vm128_vm2  ;;  %vm192_vm3 = vcmp.eq.s32.totalorder %v663_v63, %v665_v5 }
  0xa3   :  { %v169_v24 = vpop.permute.xlu0 %168  ;;  %v118_v27 = vadd.f32 %v360_v25, %v104_v23  ;;  %v361_v28 = vsel %vm129_vm6, 1.0, %v494_v10 }
  0xa4   :  { %vm170_vm11 = vcmp.eq.s32.totalorder %v169_v24, 1 }
  0xa5   :  { %v135_v2 = vpop.permute.xlu1 %134  ;;  %v132_v30 = vadd.f32 %v361_v28, %v118_v27 }
  0xa6   :  { %vm136_vm8 = vcmp.eq.s32.totalorder %v135_v2, %v665_v5 }
  0xa7   :  { %v211_v31 = vpop.permute.xlu0 %210 }
  0xa8   :  { %vm212_vm6 = vcmp.eq.s32.totalorder %v211_v31, 1 }
  0xaa   :  { %v141_v4 = vpop.permute.xlu1 %140 }
  0xab   :  { %vm142_vm5 = vcmp.eq.s32.totalorder %v141_v4, 1 }
  0xac   :  { %vm143_vm10 = vmand %vm136_vm8, %vm142_vm5  ;;  %v233_v37 = vpop.permute.xlu0 %232 }
  0xad   :  { %v362_v29 = vsel %vm143_vm10, 1.0, %v494_v10 }
  0xae   :  { %v155_v7 = vpop.permute.xlu1 %154  ;;  %v146_v34 = vadd.f32 %v362_v29, %v132_v30 }
  0xaf   :  { %vm156_vm9 = vcmp.eq.s32.totalorder %v155_v7, 1 }
  0xb0   :  { %vm157_vm13 = vmand %vm150_vm7, %vm156_vm9 }
  0xb1   :  { %v363_v33 = vsel %vm157_vm13, 1.0, %v494_v10  ;;  %v253_v46 = vpop.permute.xlu0 %252 }
  0xb2   :  { %v160_v36 = vadd.f32 %v363_v33, %v146_v34 }
  0xb3   :  { %v163_v9 = vpop.permute.xlu1 %162 }
  0xb4   :  { %vm164_vm12 = vcmp.eq.s32.totalorder %v163_v9, %v665_v5 }
  0xb5   :  { %vm171_vm15 = vmand %vm164_vm12, %vm170_vm11  ;;  %vm234_vm11 = vcmp.eq.s32.totalorder %v233_v37, %v665_v5 }
  0xb6   :  { %v364_v35 = vsel %vm171_vm15, 1.0, %v494_v10 }
  0xb7   :  { %v174_v40 = vadd.f32 %v364_v35, %v160_v36 }
  0xb8   :  { %v177_v14 = vpop.permute.xlu1 %176 }
  0xb9   :  { %vm178_vm0 = vcmp.eq.s32.totalorder %v177_v14, %v665_v5 }
  0xbd   :  { %v183_v18 = vpop.permute.xlu1 %182 }
  0xbe   :  { %vm184_vm14 = vcmp.eq.s32.totalorder %v183_v18, 1 }
  0xbf   :  { %vm185_vm2 = vmand %vm178_vm0, %vm184_vm14  ;;  %vm254_vm14 = vcmp.eq.s32.totalorder %v253_v46, 1 }
  0xc0   :  { %v365_v38 = vsel %vm185_vm2, 1.0, %v494_v10 }
  0xc1   :  { %v197_v21 = vpop.permute.xlu1 %196  ;;  %v188_v42 = vadd.f32 %v365_v38, %v174_v40 }
  0xc2   :  { %vm198_vm1 = vcmp.eq.s32.totalorder %v197_v21, 1 }
  0xc3   :  { %vm199_vm5 = vmand %vm192_vm3, %vm198_vm1  ;;  %vm339_vm1 = vcmask 261120  }
  0xc4   :  { %v366_v41 = vsel %vm199_vm5, 1.0, %v494_v10 }
  0xc5   :  { %v202_v45 = vadd.f32 %v366_v41, %v188_v42 }
  0xc6   :  { %v205_v26 = vpop.permute.xlu1 %204 }
  0xc7   :  { %vm206_vm4 = vcmp.eq.s32.totalorder %v205_v26, %v665_v5 }
  0xc8   :  { %vm213_vm7 = vmand %vm206_vm4, %vm212_vm6 }
  0xc9   :  { %v367_v43 = vsel %vm213_vm7, 1.0, %v494_v10 }
  0xca   :  { %v216_v48 = vadd.f32 %v367_v43, %v202_v45 }
  0xcb   :  { %v219_v32 = vpop.permute.xlu1 %218 }
  0xcc   :  { %vm220_vm9 = vcmp.eq.s32.totalorder %v219_v32, %v665_v5 }
  0xd0   :  { %v225_v39 = vpop.permute.xlu1 %224 }
  0xd1   :  { %vm226_vm8 = vcmp.eq.s32.totalorder %v225_v39, 1 }
  0xd2   :  { %vm227_vm10 = vmand %vm220_vm9, %vm226_vm8 }
  0xd3   :  { %v368_v47 = vsel %vm227_vm10, 1.0, %v494_v10 }
  0xd4   :  { %v239_v44 = vpop.permute.xlu1 %238  ;;  %v230_v50 = vadd.f32 %v368_v47, %v216_v48 }
  0xd5   :  { %vm240_vm12 = vcmp.eq.s32.totalorder %v239_v44, 1 }
  0xd6   :  { %vm241_vm13 = vmand %vm234_vm11, %vm240_vm12 }
  0xd7   :  { %v369_v49 = vsel %vm241_vm13, 1.0, %v494_v10 }
  0xd8   :  { %v244_v52 = vadd.f32 %v369_v49, %v230_v50 }
  0xd9   :  { %v247_v51 = vpop.permute.xlu1 %246 }
  0xda   :  { %vm248_vm15 = vcmp.eq.s32.totalorder %v247_v51, %v665_v5 }
  0xdb   :  { %vm255_vm0 = vmand %vm248_vm15, %vm254_vm14 }
  0xdc   :  { %v370_v53 = vsel %vm255_vm0, 1.0, %v494_v10 }
  0xdd   :  { %v258_v54 = vadd.f32 %v370_v53, %v244_v52 }
  0xde   :  { %v335_v55 = vpop.permute.xlu1 %334 }
  0xdf   :  { %421 = vmatmul.mubr.f32.vlgmr.msra.gmra.mxu0 %v258_v54  ;;  %465 = vrcp.f32 %v335_v55 }
  0xec   :  { %v466_v56 = vpop.eup %465 }
 0x19f   :  { %v325_v57 = vpop.f32.mrf.mxu0 }
 0x1a0   :  { %v338_v58 = vmul.f32 %v466_v56, %v325_v57 }
 0x1a1   :  { %v422_v59 = vpop.f32.mrf.mxu0 }
 0x1a2   :  { %340 = vst.msk [vmem:[#allocation2] sm:$0xff] %vm339_vm1, %v338_v58 }
 0x1a3   :  { %478 = shalt.err (!%p475_p4)
}
 0x1a4   :  { %350 = dma.vmem_to_hbm [thread:$0]  %s348_s17, 128, %s706_s3, [#allocation3]  }
 0x1a5   :  { %487 = dma.done.wait [#allocation3], 128  }
 0x1a6   :  { %488 = vsyncadd [#allocation3], 4294967168 }
 0x1a7   :  { %354 = vsyncpa [#allocation3], 1 }

</bundles_post_ra>
